<compile_context>
chip_gen: v6e
topology: v6e:2x2x1
jax: 0.10.0
libtpu: 0.0.40
codegen_flags: <defaults>
</compile_context>

<pallas_src>
import functools

import jax
import jax.numpy as jnp
from jax import lax
from jax.experimental import pallas as pl
from jax.experimental.pallas import tpu as pltpu


_VMEM_LIMIT = 48 * 1024 * 1024  # safe on v5e/v6e (128 MiB) and v7x (64 MiB)


# ----------------------------------------------------------------------------
# Small helpers
# ----------------------------------------------------------------------------
def _round_up(x, m):
    return ((x + m - 1) // m) * m


def _pad2(x, rows, cols, dtype):
    out = jnp.zeros((rows, cols), dtype)
    return out.at[: x.shape[0], : x.shape[1]].set(x.astype(dtype))


def _pick_tiling(num_nodes):
    """Padded node count + (row tile, reduction tile), all lane/sublane friendly."""
    if num_nodes <= 512:
        np_ = _round_up(num_nodes, 128)
        return np_, np_, np_          # single tile; grid still exercises accum path
    tm, tk = 256, 512                 # 256-multiples feed v6e/v7x 256-wide MXU
    np_ = _round_up(num_nodes, tk)    # tk is a multiple of tm -> divisible by both
    return np_, tm, tk


# ----------------------------------------------------------------------------
# Pallas kernels
# ----------------------------------------------------------------------------
def xw_kernel(x_ref, w_ref, o_ref):
    # Feature transform: (TM, Fp) @ (Fp, Hp) -> (TM, Hp), f32 accumulation.
    o_ref[...] = jnp.dot(
        x_ref[...], w_ref[...], preferred_element_type=jnp.float32
    ).astype(o_ref.dtype)


def agg_kernel(a_ref, xw_ref, b_ref, o_ref, acc_ref, *, apply_relu):
    # Neighborhood aggregation: out[i] = sum_k A[i,k] @ XW[k] + b, optional ReLU.
    k = pl.program_id(1)

    @pl.when(k == 0)
    def _():
        acc_ref[...] = jnp.zeros_like(acc_ref)

    acc_ref[...] += jnp.dot(
        a_ref[...], xw_ref[...], preferred_element_type=jnp.float32
    )

    @pl.when(k == pl.num_programs(1) - 1)
    def _():
        out = acc_ref[...] + b_ref[...]
        if apply_relu:
            out = jnp.maximum(out, 0.0)
        o_ref[...] = out.astype(o_ref.dtype)


def softmax_tau_kernel(x_ref, o_ref, *, tau, valid_cols):
    z = x_ref[...].astype(jnp.float32) * (1.0 / tau)
    col = lax.broadcasted_iota(jnp.int32, z.shape, 1)
    z = jnp.where(col < valid_cols, z, -1e30)          # mask padded class lanes
    z = z - jnp.max(z, axis=-1, keepdims=True)
    e = jnp.exp(z)
    denom = jnp.sum(e, axis=-1, keepdims=True)
    o_ref[...] = (e * pl.reciprocal(denom, approx=True)).astype(o_ref.dtype)


# ----------------------------------------------------------------------------
# pallas_call wrappers
# ----------------------------------------------------------------------------
def xw_matmul(x_pad, w_pad, tm):
    np_, fp = x_pad.shape
    hp = w_pad.shape[1]
    return pl.pallas_call(
        xw_kernel,
        grid=(np_ // tm,),
        out_shape=jax.ShapeDtypeStruct((np_, hp), jnp.bfloat16),
        in_specs=[
            pl.BlockSpec((tm, fp), lambda i: (i, 0)),
            pl.BlockSpec((fp, hp), lambda i: (0, 0)),
        ],
        out_specs=pl.BlockSpec((tm, hp), lambda i: (i, 0)),
        compiler_params=pltpu.CompilerParams(
            dimension_semantics=("parallel",),
            vmem_limit_bytes=_VMEM_LIMIT,
        ),
    )(x_pad, w_pad)


def aggregate(a_pad, xw_pad, b_pad, apply_relu, out_dtype, tm, tk):
    np_ = a_pad.shape[0]
    hp = xw_pad.shape[1]
    return pl.pallas_call(
        functools.partial(agg_kernel, apply_relu=apply_relu),
        grid=(np_ // tm, np_ // tk),
        out_shape=jax.ShapeDtypeStruct((np_, hp), out_dtype),
        in_specs=[
            pl.BlockSpec((tm, tk), lambda i, k: (i, k)),
            pl.BlockSpec((tk, hp), lambda i, k: (k, 0)),
            pl.BlockSpec((1, hp), lambda i, k: (0, 0)),
        ],
        out_specs=pl.BlockSpec((tm, hp), lambda i, k: (i, 0)),
        scratch_shapes=[pltpu.VMEM((tm, hp), jnp.float32)],
        compiler_params=pltpu.CompilerParams(
            dimension_semantics=("parallel", "arbitrary"),
            vmem_limit_bytes=_VMEM_LIMIT,
        ),
    )(a_pad, xw_pad, b_pad)


def softmax_tau(logits_pad, tau, valid_cols, tm):
    np_, cp = logits_pad.shape
    return pl.pallas_call(
        functools.partial(softmax_tau_kernel, tau=float(tau), valid_cols=int(valid_cols)),
        grid=(np_ // tm,),
        out_shape=jax.ShapeDtypeStruct((np_, cp), jnp.float32),
        in_specs=[pl.BlockSpec((tm, cp), lambda i: (i, 0))],
        out_specs=pl.BlockSpec((tm, cp), lambda i: (i, 0)),
        compiler_params=pltpu.CompilerParams(
            dimension_semantics=("parallel",),
            vmem_limit_bytes=_VMEM_LIMIT,
        ),
    )(logits_pad)


# ----------------------------------------------------------------------------
# Model glue (plain JAX): parameter init, normalized adjacency, GMNN logic
# ----------------------------------------------------------------------------
def build_feature_list(in_channels, num_classes, num_hidden, num_layers):
    feature_list = [in_channels, num_hidden, num_classes]
    for _ in range(num_layers - 2):
        feature_list.insert(-1, num_hidden)
    return feature_list


def init_gcn_params(key, feature_list):
    params = []
    for i in range(len(feature_list) - 1):
        key, k = jax.random.split(key)
        fan_in, fan_out = feature_list[i], feature_list[i + 1]
        limit = (6.0 / (fan_in + fan_out)) ** 0.5  # glorot uniform (GCNConv default)
        w = jax.random.uniform(k, (fan_in, fan_out), jnp.float32, -limit, limit)
        b = jnp.zeros((fan_out,), jnp.float32)
        params.append((w, b))
    return params


def pad_params(params):
    """Zero-pad weights/bias to 128-multiples; W -> bf16, b -> f32 row vector."""
    padded = []
    for w, b in params:
        fin, fout = w.shape
        fp, hp = _round_up(fin, 128), _round_up(fout, 128)
        w_pad = _pad2(w, fp, hp, jnp.bfloat16)
        b_pad = _pad2(b.reshape(1, -1), 1, hp, jnp.float32)
        padded.append((w_pad, b_pad))
    return padded


def build_norm_adj(edge_index, num_nodes, padded_nodes):
    # PyG GCNConv gcn_norm: add self-loops, symmetric D^-1/2 (A + I) D^-1/2;
    # messages flow src (row 0) -> dst (row 1), aggregated at dst.
    src = edge_index[0]
    dst = edge_index[1]
    loop = jnp.arange(num_nodes, dtype=src.dtype)
    src = jnp.concatenate([src, loop])
    dst = jnp.concatenate([dst, loop])
    a = jnp.zeros((num_nodes, num_nodes), jnp.float32).at[dst, src].add(1.0)
    deg = jnp.sum(a, axis=1)
    dinv = jnp.where(deg > 0, 1.0 / jnp.sqrt(deg), 0.0)
    a_hat = dinv[:, None] * a * dinv[None, :]
    return _pad2(a_hat, padded_nodes, padded_nodes, jnp.bfloat16)


def gcn_forward(a_pad, x_pad, padded_params, tm, tk):
    """Padded GCN forward. Returns padded f32 logits [Np, C_pad]."""
    n_layers = len(padded_params)
    h = x_pad
    for i, (w_pad, b_pad) in enumerate(padded_params):
        last = i == n_layers - 1
        xw = xw_matmul(h, w_pad, tm)
        h = aggregate(
            a_pad, xw, b_pad,
            apply_relu=not last,
            out_dtype=jnp.float32 if last else jnp.bfloat16,
            tm=tm, tk=tk,
        )
        # dropout skipped: eval mode (training=False) is the identity
    return h


def gmnn_forward(x, edge_index, params_q, params_p, train_mask, target,
                 num_classes, args, key):
    n = x.shape[0]
    np_, tm, tk = _pick_tiling(n)
    a_pad = build_norm_adj(edge_index, n, np_)

    pq = pad_params(params_q)
    pp = pad_params(params_p)
    cp = _round_up(num_classes, 128)

    def q_logits_padded():
        fp = _round_up(x.shape[1], 128)
        x_pad = _pad2(x, np_, fp, jnp.bfloat16)
        return gcn_forward(a_pad, x_pad, pq, tm, tk)

    if args["inference"] == "q":
        return q_logits_padded()[:n, :num_classes]

    if args["inference"] != "p":
        raise ValueError(args["inference"])

    # 'p' inference: q forward + softmax are sample-independent -> compute once.
    logits_pad = q_logits_padded()
    preds_pad = softmax_tau(logits_pad, args["tau"], num_classes, tm)
    preds = preds_pad[:n, :num_classes]

    gold = jax.nn.one_hot(target, num_classes, dtype=jnp.float32)

    def p_forward(inputs_p):
        if args["use_gold"] == 1:
            inputs_p = jnp.where(train_mask[:, None], gold, inputs_p)
        xp = _pad2(inputs_p, np_, cp, jnp.bfloat16)
        return gcn_forward(a_pad, xp, pp, tm, tk)[:n, :num_classes]

    if args["draw"] == "exp":
        # deterministic p-input: every sample identical -> run p-model once
        return p_forward(preds)
    elif args["draw"] == "max":
        idx_lb = jnp.argmax(preds, axis=-1)
        return p_forward(jax.nn.one_hot(idx_lb, num_classes, dtype=jnp.float32))
    elif args["draw"] == "smp":
        # TODO(synk): torch.multinomial draws; jax.random.categorical reproduces the
        # distribution but not torch's RNG stream.
        outs = []
        for _ in range(args["num_samples"]):
            key, k = jax.random.split(key)
            idx_lb = jax.random.categorical(k, jnp.log(preds + 1e-20), axis=-1)
            outs.append(
                p_forward(jax.nn.one_hot(idx_lb, num_classes, dtype=jnp.float32))
            )
        return jnp.mean(jnp.stack(outs, axis=0), axis=0)
    else:
        raise ValueError(args["draw"])


# ----------------------------------------------------------------------------
# Pure-JAX reference (f32, unpadded) for a sanity check of the q path
# ----------------------------------------------------------------------------
def _gcn_forward_ref(x, edge_index, params):
    n = x.shape[0]
    src, dst = edge_index[0], edge_index[1]
    loop = jnp.arange(n, dtype=src.dtype)
    src = jnp.concatenate([src, loop])
    dst = jnp.concatenate([dst, loop])
    a = jnp.zeros((n, n), jnp.float32).at[dst, src].add(1.0)
    deg = jnp.sum(a, axis=1)
    dinv = jnp.where(deg > 0, 1.0 / jnp.sqrt(deg), 0.0)
    a_hat = dinv[:, None] * a * dinv[None, :]
    h = x
    for i, (w, b) in enumerate(params):
        h = a_hat @ (h @ w) + b[None, :]
        if i < len(params) - 1:
            h = jnp.maximum(h, 0.0)
    return h


# ----------------------------------------------------------------------------
# Demo
# ----------------------------------------------------------------------------
if __name__ == "__main__":
    key = jax.random.PRNGKey(0)

    # small, module-consistent shapes
    N = 16            # nodes
    in_channels = 8
    num_classes = 4
    num_hidden = 32
    num_layers = 2
    drop_rate = 0.5   # unused at inference (eval mode)

    k_x, k_e, k_q, k_p, k_t, k_s = jax.random.split(key, 6)

    x = jax.random.normal(k_x, (N, in_channels), jnp.float32)

    # deterministic graph: a ring with symmetric edges
    src = jnp.arange(N, dtype=jnp.int32)
    dst = (src + 1) % N
    edge_index = jnp.stack(
        [jnp.concatenate([src, dst]), jnp.concatenate([dst, src])], axis=0
    )  # [2, 2N]

    train_mask = (jnp.arange(N) % 4) == 0
    target = jax.random.randint(k_t, (N,), 0, num_classes)

    # gnnq: in_channels -> hidden -> classes ; gnnp: classes -> hidden -> classes
    params_q = init_gcn_params(
        k_q, build_feature_list(in_channels, num_classes, num_hidden, num_layers))
    params_p = init_gcn_params(
        k_p, build_feature_list(num_classes, num_classes, num_hidden, num_layers))

    args_q = {"inference": "q", "num_samples": 2, "tau": 1.0,
              "draw": "exp", "use_gold": 1}
    args_p = {"inference": "p", "num_samples": 2, "tau": 1.0,
              "draw": "exp", "use_gold": 1}

    out_q = gmnn_forward(x, edge_index, params_q, params_p, train_mask, target,
                         num_classes, args_q, k_s)
    out_p = gmnn_forward(x, edge_index, params_q, params_p, train_mask, target,
                         num_classes, args_p, k_s)
    jax.block_until_ready(out_q)
    jax.block_until_ready(out_p)

    assert out_q.shape == (N, num_classes)
    assert out_p.shape == (N, num_classes)

    # sanity check the q path against an f32 reference (bf16-level tolerance)
    ref_q = _gcn_forward_ref(x, edge_index, params_q)
    max_err = float(jnp.max(jnp.abs(out_q - ref_q)))
    assert max_err < 5e-2, f"q-path mismatch vs reference: max abs err {max_err}"

    print("KERNEL_OK")
</pallas_src>

<mosaic_0001>
module attributes {stable_mosaic.version = 11 : i64} {
  func.func @xw_kernel(%arg0: i32, %arg1: memref<128x128xbf16, #tpu.memory_space<vmem>>, %arg2: memref<128x128xbf16, #tpu.memory_space<vmem>>, %arg3: memref<128x128xbf16, #tpu.memory_space<vmem>>) attributes {dimension_semantics = [#tpu.dimension_semantics<parallel>], iteration_bounds = array<i64: 1>, scalar_prefetch = 0 : i64, scratch_operands = 0 : i64, tpu.core_type = #tpu.core_type<tc>, window_params = [{transform_indices = @transform_0, window_bounds = array<i64: 128, 128>}, {pipeline_mode = #tpu.pipeline_mode<synchronous>, transform_indices = @transform_1, window_bounds = array<i64: 128, 128>}, {transform_indices = @transform_2, window_bounds = array<i64: 128, 128>}]} {
    %c0 = arith.constant 0 : index
    %c0_0 = arith.constant 0 : index
    %0 = vector.load %arg1[%c0, %c0_0] : memref<128x128xbf16, #tpu.memory_space<vmem>>, vector<128x128xbf16>
    %c0_1 = arith.constant 0 : index
    %c0_2 = arith.constant 0 : index
    %1 = vector.load %arg2[%c0_1, %c0_2] : memref<128x128xbf16, #tpu.memory_space<vmem>>, vector<128x128xbf16>
    %cst = arith.constant dense<0.000000e+00> : vector<128x128xf32>
    %2 = tpu.matmul %0, %1, %cst {dimension_numbers = #tpu.dot_dimension_numbers<[1], [0], [0], [1], [0, 0, 1, 1], [], []>} : vector<128x128xbf16>, vector<128x128xbf16>, vector<128x128xf32> -> vector<128x128xf32>
    %3 = arith.truncf %2 : vector<128x128xf32> to vector<128x128xbf16>
    %c0_3 = arith.constant 0 : index
    %c0_4 = arith.constant 0 : index
    %4 = vector.load %arg3[%c0_3, %c0_4] : memref<128x128xbf16, #tpu.memory_space<vmem>>, vector<128x128xbf16>
    tpu.vector_store %arg3[%c0_3, %c0_4], %3 {strides = array<i32>} : memref<128x128xbf16, #tpu.memory_space<vmem>>, vector<128x128xbf16>,
    return
  }
  func.func @transform_0(%arg0: i32) -> (i32, i32) {
    %c0_i32 = arith.constant 0 : i32
    %c0_i32_0 = arith.constant 0 : i32
    return %arg0, %c0_i32 : i32, i32
  }
  func.func @transform_1(%arg0: i32) -> (i32, i32) {
    %c0_i32 = arith.constant 0 : i32
    %c0_i32_0 = arith.constant 0 : i32
    %c0_i32_1 = arith.constant 0 : i32
    return %c0_i32, %c0_i32_0 : i32, i32
  }
  func.func @transform_2(%arg0: i32) -> (i32, i32) {
    %c0_i32 = arith.constant 0 : i32
    %c0_i32_0 = arith.constant 0 : i32
    return %arg0, %c0_i32 : i32, i32
  }
}

</mosaic_0001>

<bundles_post_ra>
// kernel: tpu_custom_call.1
= control target key start
LH: loop header
LB: loop body
LE: loop exit
PB: predicated region body
PF: predicated region fallthrough
CT: control target
= control target key end

     0   :  { %7 = vsyncpa [#allocation3], 0  ;;  %s648_s0 = inlined_call_operand.hbm [shape: bf16[128,128], index: 0, kind: input, shape index: {}]   ;;  %s649_s1 = inlined_call_operand.hbm [shape: bf16[128,128], index: 1, kind: input, shape index: {}]   ;;  %s650_s2 = inlined_call_operand.hbm [shape: bf16[128,128], index: 2, kind: output, shape index: {}]  }
   0x1   :  { %8 = vsyncpa [#allocation6], 0 }
   0x2   :  { %9 = vsyncpa [#allocation4], 0  ;;  %s610_s9 = smov [#allocation2]  }
   0x3   :  { %s15_s10 = sshll.u32 %s610_s9, 4  ;;  %s16_s10 = int_to_ptr.vmem [resolvable:$true] %s15_s10 }
   0x4   :  { %s552_s11 = scalar_lea.vmem %s16_s10, 1024  ;;  %p557_p1 = scmp.lt.s32.totalorder %s16_s10, %s16_s10 }
   0x5   :  { %p553_p0 = scmp.ne.s32.totalorder %s16_s10, %s552_s11  ;;  %p558_p2 = scmp.lt.s32.totalorder %s552_s11, %s552_s11 }
   0x7   :  { %p559_p3 = por %p558_p2, %p557_p1 }
   0x9   :  { %p560_p4 = pnand %p559_p3, %p553_p0 }
   0xb   :  { %563 = shalt.err (!%p560_p4)
}
   0xc   :  { %s611_s12 = smov 64   ;;  %s612_s13 = smov 4  }
   0xd   :  { %21 = dma.hbm_to_vmem [thread:$0]  %s648_s0, 1024, %s16_s10, [#allocation3], %s611_s12, %s611_s12, %s612_s13  }
   0xe   :  { %s613_s16 = smov [#allocation5]  }
   0xf   :  { %s27_s17 = sshll.u32 %s613_s16, 4  ;;  %s28_s17 = int_to_ptr.vmem [resolvable:$true] %s27_s17 }
  0x10   :  { %s572_s18 = scalar_lea.vmem %s28_s17, 1024  ;;  %p577_p6 = scmp.lt.s32.totalorder %s28_s17, %s28_s17 }
  0x11   :  { %p573_p5 = scmp.ne.s32.totalorder %s28_s17, %s572_s18  ;;  %p578_p7 = scmp.lt.s32.totalorder %s572_s18, %s572_s18 }
  0x13   :  { %p579_p8 = por %p578_p7, %p577_p6 }
  0x15   :  { %p580_p9 = pnand %p579_p8, %p573_p5 }
  0x17   :  { %583 = shalt.err (!%p580_p9)
}
  0x18   :  { %33 = dma.hbm_to_vmem [thread:$0]  %s649_s1, 1024, %s28_s17, [#allocation6], %s611_s12, %s611_s12, %s612_s13  }
  0x19   :  { %604 = dma.done.wait [#allocation3], 1024  }
  0x1a   :  { %605 = vsyncadd [#allocation3], 4294966272 }
  0x1b   :  { %606 = dma.done.wait [#allocation6], 1024  }
  0x1c   :  { %607 = vsyncadd [#allocation6], 4294966272  ;;  %v528_v0 = vld [vmem:[#allocation5 + $0x38] sm:$0xff]   ;;  %v529_v1 = vld [vmem:[#allocation5 + $0x30] sm:$0xff]   ;;  %s614_s0 = smov [#allocation7]  }
  0x1d   :  { %475 = vmatprep.subr.bf16.mxu0 %v528_v0  ;;  %507 = vmatprep.subr.bf16.mxu1 %v528_v0  ;;  %v530_v2 = vld [vmem:[#allocation5 + $0x28] sm:$0xff]   ;;  %v531_v3 = vld [vmem:[#allocation5 + $0x20] sm:$0xff]   ;;  %v532_v6 = vld [vmem:[#allocation5 + $0x18] sm:$0xff]   ;;  %s351_s1 = sshll.u32 %s614_s0, 4  ;;  %s352_s1 = int_to_ptr.vmem [resolvable:$true] %s351_s1 }
  0x1e   :  { %476 = vmatpush3.bf16.msra.mxu0 %v528_v0  ;;  %515 = vmatpush3.bf16.msra.mxu1 %v528_v0  ;;  %v536_v4 = vld [vmem:[#allocation2] sm:$0xff]   ;;  %v533_v7 = vld [vmem:[#allocation5 + $0x10] sm:$0xff]   ;;  %v534_v8 = vld [vmem:[#allocation5 + $0x8] sm:$0xff]   ;;  %s584_s21 = scalar_lea.vmem %s352_s1, 1024  ;;  %p589_p11 = scmp.lt.s32.totalorder %s352_s1, %s352_s1 }
  0x1f   :  { %477 = vmatprep.subr.bf16.mxu0 %v529_v1  ;;  %508 = vmatprep.subr.bf16.mxu1 %v529_v1  ;;  %v537_v5 = vld [vmem:[#allocation2 + $0x20] sm:$0xff]   ;;  %v538_v10 = vld [vmem:[#allocation2 + $0x8] sm:$0xff]   ;;  %v540_v12 = vld [vmem:[#allocation2 + $0x10] sm:$0xff]   ;;  %p585_p10 = scmp.ne.s32.totalorder %s352_s1, %s584_s21  ;;  %p590_p12 = scmp.lt.s32.totalorder %s584_s21, %s584_s21 }
  0x20   :  { %491 = vmatprep.mubr.bf16.mxu0 %v536_v4  ;;  %499 = vmatprep.mubr.bf16.mxu1 %v537_v5  ;;  %v535_v9 = vld [vmem:[#allocation5] sm:$0xff]   ;;  %v539_v11 = vld [vmem:[#allocation2 + $0x28] sm:$0xff]   ;;  %v541_v13 = vld [vmem:[#allocation2 + $0x30] sm:$0xff]  }
  0x21   :  { %v542_v14 = vld [vmem:[#allocation2 + $0x18] sm:$0xff]   ;;  %p591_p13 = por %p590_p12, %p589_p11 }
  0x22   :  { %478 = vmatpush3.bf16.msra.mxu0 %v529_v1  ;;  %516 = vmatpush3.bf16.msra.mxu1 %v529_v1  ;;  %v543_v15 = vld [vmem:[#allocation2 + $0x38] sm:$0xff]  }
  0x23   :  { %479 = vmatprep.subr.bf16.mxu0 %v530_v2  ;;  %509 = vmatprep.subr.bf16.mxu1 %v530_v2  ;;  %p592_p0 = pnand %p591_p13, %p585_p10 }
  0x26   :  { %480 = vmatpush3.bf16.msra.mxu0 %v530_v2  ;;  %517 = vmatpush3.bf16.msra.mxu1 %v530_v2 }
  0x27   :  { %481 = vmatprep.subr.bf16.mxu0 %v531_v3  ;;  %510 = vmatprep.subr.bf16.mxu1 %v531_v3 }
  0x2a   :  { %482 = vmatpush3.bf16.msra.mxu0 %v531_v3  ;;  %518 = vmatpush3.bf16.msra.mxu1 %v531_v3 }
  0x2b   :  { %483 = vmatprep.subr.bf16.mxu0 %v532_v6  ;;  %511 = vmatprep.subr.bf16.mxu1 %v532_v6 }
  0x2e   :  { %484 = vmatpush3.bf16.msra.mxu0 %v532_v6  ;;  %519 = vmatpush3.bf16.msra.mxu1 %v532_v6 }
  0x2f   :  { %485 = vmatprep.subr.bf16.mxu0 %v533_v7  ;;  %512 = vmatprep.subr.bf16.mxu1 %v533_v7 }
  0x32   :  { %486 = vmatpush3.bf16.msra.mxu0 %v533_v7  ;;  %520 = vmatpush3.bf16.msra.mxu1 %v533_v7 }
  0x33   :  { %487 = vmatprep.subr.bf16.mxu0 %v534_v8  ;;  %513 = vmatprep.subr.bf16.mxu1 %v534_v8 }
  0x36   :  { %488 = vmatpush3.bf16.msra.mxu0 %v534_v8  ;;  %521 = vmatpush3.bf16.msra.mxu1 %v534_v8 }
  0x37   :  { %489 = vmatprep.subr.bf16.mxu0 %v535_v9  ;;  %514 = vmatprep.subr.bf16.mxu1 %v535_v9 }
  0x3a   :  { %490 = vmatpush3.bf16.msra.mxu0 %v535_v9  ;;  %522 = vmatpush3.bf16.msra.mxu1 %v535_v9 }
  0x3d   :  { %492 = vmatmul.mubr.bf16.vlgmr.msra.gmra.mxu0 %v538_v10  ;;  %500 = vmatmul.mubr.bf16.vlgmr.msra.gmra.mxu1 %v539_v11 }
  0x3e   :  { %495 = vmatprep.mubr.bf16.mxu0 %v540_v12  ;;  %503 = vmatprep.mubr.bf16.mxu1 %v541_v13 }
  0x45   :  { %496 = vmatmul.mubr.bf16.gmra.mxu0 %v542_v14  ;;  %504 = vmatmul.mubr.bf16.gmra.mxu1 %v543_v15 }
  0xfd   :  { %v493_v16 = vpop.f32.mrf.mxu0  ;;  %v501_v17 = vpop.f32.mrf.mxu1 }
  0xff   :  { %v203_v18 = vpop.f32.mrf.mxu0  ;;  %v235_v19 = vpop.f32.mrf.mxu1 }
 0x101   :  { %v494_v20 = vpop.f32.mrf.mxu0  ;;  %v502_v21 = vpop.f32.mrf.mxu1 }
 0x102   :  { %v420_v22 = vpack.c.bf16 %v494_v20, %v493_v16  ;;  %v440_v23 = vpack.c.bf16 %v502_v21, %v501_v17 }
 0x103   :  { %v206_v24 = vpop.f32.mrf.mxu0  ;;  %v238_v25 = vpop.f32.mrf.mxu1 }
 0x104   :  { %452 = vst [vmem:[#allocation7 + $0x8] sm:$0xff] %v420_v22   ;;  %456 = vst [vmem:[#allocation7 + $0x28] sm:$0xff] %v440_v23   ;;  %v415_v26 = vpack.c.bf16 %v206_v24, %v203_v18  ;;  %v435_v27 = vpack.c.bf16 %v238_v25, %v235_v19 }
 0x105   :  { %v497_v28 = vpop.f32.mrf.mxu0  ;;  %v505_v29 = vpop.f32.mrf.mxu1 }
 0x106   :  { %416 = vst [vmem:[#allocation7] sm:$0xff] %v415_v26   ;;  %455 = vst [vmem:[#allocation7 + $0x20] sm:$0xff] %v435_v27  }
 0x107   :  { %v219_v30 = vpop.f32.mrf.mxu0  ;;  %v251_v31 = vpop.f32.mrf.mxu1 }
 0x109   :  { %v498_v32 = vpop.f32.mrf.mxu0  ;;  %v506_v33 = vpop.f32.mrf.mxu1 }
 0x10a   :  { %v430_v34 = vpack.c.bf16 %v498_v32, %v497_v28  ;;  %v450_v35 = vpack.c.bf16 %v506_v33, %v505_v29 }
 0x10b   :  { %v222_v36 = vpop.f32.mrf.mxu0  ;;  %v254_v37 = vpop.f32.mrf.mxu1 }
 0x10c   :  { %454 = vst [vmem:[#allocation7 + $0x18] sm:$0xff] %v430_v34   ;;  %458 = vst [vmem:[#allocation7 + $0x38] sm:$0xff] %v450_v35   ;;  %v425_v38 = vpack.c.bf16 %v222_v36, %v219_v30  ;;  %v445_v39 = vpack.c.bf16 %v254_v37, %v251_v31 }
 0x10e   :  { %453 = vst [vmem:[#allocation7 + $0x10] sm:$0xff] %v425_v38   ;;  %457 = vst [vmem:[#allocation7 + $0x30] sm:$0xff] %v445_v39  }
 0x10f   :  { %595 = shalt.err (!%p592_p0)
}
 0x110   :  { %357 = dma.vmem_to_hbm [thread:$0]  %s352_s1, 1024, %s650_s2, [#allocation4], %s611_s12, %s611_s12, %s612_s13  }
 0x111   :  { %608 = dma.done.wait [#allocation4], 1024  }
 0x112   :  { %609 = vsyncadd [#allocation4], 4294966272 }
 0x113   :  { %361 = vsyncpa [#allocation3], 1 }
 0x114   :  { %362 = vsyncpa [#allocation6], 1 }
 0x115   :  { %363 = vsyncpa [#allocation4], 1 }

</bundles_post_ra>
